<compile_context>
chip_gen: v7x
topology: tpu7x:2x2x1
jax: 0.10.0
libtpu: 0.0.40
codegen_flags: <defaults>
</compile_context>

<pallas_src>
import functools
import math

import numpy as np

import jax
import jax.numpy as jnp
from jax import lax
from jax.experimental import pallas as pl
from jax.experimental.pallas import tpu as pltpu


# ----------------------------- noise schedules (host, scalar) ----------------
def _schedule_np(name, t):
    t = float(t)
    if name == 'cosine':
        return math.cos(0.5 * math.pi * t)
    if name == 'cosine_plus':
        return 0.5 * (1.0 + math.cos(math.pi * t))
    if name == 'linear':
        return 1.0 - t
    if name == 'quadratic':
        return (1.0 - t) ** 2
    if name == 'square':
        return 1.0 - t * t
    if name == 'cube':
        return 1.0 - t ** 3
    if name == 'sqrt':
        return 1.0 - math.sqrt(t)
    if name == 'convex':
        return (1.0 - t) ** 3
    raise ValueError(f'Unsupported schedule: {name}')


# -------------------------------- kernel ------------------------------------
def _randperm_kernel(row_ref, col_ref, perm_ref, *, tb, n_pad, c):
    """One grid step = TB batch samples.

    torch.randperm(seq_len) is emulated as the rank order of pairwise-distinct random
    keys:
      phase 1: rank[i] = #{j : key[j] < key[i]}   (VPU compare/accumulate, 1 lane reduce)
      phase 2: perm[p] = i s.t. rank[i] == p      (one-hot -> MXU matmul with f32 iota
                                                   weights, chunked over p)
    Keys are (high random bits | position index), so they are pairwise distinct and the
    ranks of the first `seq_len` keys form an exact permutation; padded (sentinel) keys
    rank past seq_len and are sliced off host-side.
    """
    n_chunks = n_pad // c
    keys_col = col_ref[...]                                      # (tb, n_pad, 1) int32

    # ---- phase 1: ranks (accumulate compares, single cross-lane reduce) ---
    acc = jnp.zeros((tb, n_pad, c), jnp.int32)
    for ci in range(n_chunks):
        kc = row_ref[:, :, ci * c:(ci + 1) * c]                  # (tb, 1, c)
        acc = acc + (kc < keys_col).astype(jnp.int32)            # (tb, n_pad, c)
    rank = jnp.sum(acc, axis=2, keepdims=True)                   # (tb, n_pad, 1)

    # ---- phase 2: scatter positions into rank order via the MXU -----------
    # Hoisted constants (JAX does not CSE broadcast_in_dim inside the loop).
    p_base = lax.broadcasted_iota(jnp.int32, (tb, n_pad, c), 2)              # lane iota
    w = lax.broadcasted_iota(jnp.int32, (tb, 1, n_pad), 2).astype(jnp.float32)  # i weights
    for ci in range(n_chunks):
        onehot = ((rank - ci * c) == p_base).astype(jnp.float32)  # (tb, n_pad, c)
        # perm[b, p] = sum_i i * onehot[b, i, p]   -- exact in f32 (i < 2^24)
        chunk = jnp.einsum('bmi,bic->bmc', w, onehot,
                           preferred_element_type=jnp.float32)    # (tb, 1, c)
        perm_ref[0, :, ci * c:(ci + 1) * c] = chunk.reshape(tb, c).astype(jnp.int32)


def _random_perms_pallas(key, B, seq_len):
    """Returns (B, seq_len) int32: one independent random permutation per row."""
    n = int(seq_len)
    # Pad the sequence axis to a lane-aligned length; padded positions get sentinel
    # max-keys so their ranks land in [n, n_pad) and never pollute the real permutation.
    n_pad = max(128, ((n + 127) // 128) * 128)
    nbits = max(1, (n_pad - 1).bit_length())

    # Chunk size along the compare/scatter lane axis (keeps (tb, n_pad, c) temps small).
    if n_pad <= 256:
        c = n_pad
    elif n_pad % 256 == 0:
        c = 256
    else:
        c = 128                      # n_pad is always a multiple of 128

    # Samples per grid step: amortize ~0.35us/step overhead, keep live temps well under
    # v7x's 64 MiB VMEM (cap 4), and keep >=2 grid steps so both v7x TCs get work.
    tb = max(1, min(B, 4, (1 << 20) // (n_pad * c), max(1, B // 2)))
    b_pad = ((B + tb - 1) // tb) * tb
    n_steps = b_pad // tb

    # Composite sort key: high random bits | position index (always pairwise distinct).
    # Padding rows (b_pad > B) get real random keys too, so no degenerate rows exist.
    r = jax.random.randint(key, (b_pad, n_pad), 0, np.iinfo(np.int32).max,
                           dtype=jnp.int32)
    iota = jnp.arange(n_pad, dtype=jnp.int32)
    hi_mask = jnp.int32(((1 << 31) - 1) & ~((1 << nbits) - 1))
    ukey = (r & hi_mask) | iota[None, :]
    if n_pad != n:
        # Sentinel keys (strictly greater than every real key) for padded positions.
        ukey = jnp.where(iota[None, :] < n, ukey, hi_mask | iota[None, :])

    ukey_row = ukey.reshape(b_pad, 1, n_pad)      # lane-major view
    ukey_col = ukey.reshape(b_pad, n_pad, 1)      # sublane-major view (host relayout)

    kernel = functools.partial(_randperm_kernel, tb=tb, n_pad=n_pad, c=c)
    perm3 = pl.pallas_call(
        kernel,
        out_shape=jax.ShapeDtypeStruct((n_steps, tb, n_pad), jnp.int32),
        grid=(n_steps,),
        in_specs=[
            pl.BlockSpec((tb, 1, n_pad), lambda b: (b, 0, 0)),
            pl.BlockSpec((tb, n_pad, 1), lambda b: (b, 0, 0)),
        ],
        out_specs=pl.BlockSpec((1, tb, n_pad), lambda b: (b, 0, 0)),
        compiler_params=pltpu.CompilerParams(
            dimension_semantics=("parallel",),     # independent per-sample work -> megacore
            vmem_limit_bytes=48 << 20),            # safe on v5e/v6e (128 MiB) and v7x (64 MiB)
    )(ukey_row, ukey_col)
    return perm3.reshape(b_pad, n_pad)[:B, :n]


# ------------------------------ module wrapper -------------------------------
class MaskGenPallas:
    """JAX/Pallas port of MaskGen (method='mlm'; eval mode by default)."""

    def __init__(self, schedule='cosine', max_token=256, shape=(4, 16, 16),
                 t_range=(0.0, 1.0), budget=1024, training=False):
        self.schedule = schedule
        self.max_token = max_token
        self.shape = shape
        self.range = t_range if t_range is not None else (0.0, 1.0)
        self.budget = budget
        self.training = training

    def __call__(self, shape, t=None, key=None):
        B = shape[0]
        seq_len = int(np.prod(shape[1:]))
        if key is None:
            key = jax.random.PRNGKey(0)
        k_t, k_perm = jax.random.split(key)

        # Shape-determining scalar: like the torch reference, only ratios[0] decides
        # n_masked for the whole batch. Float path has no device sync.
        if t is None:
            t_host = np.asarray(jax.random.uniform(k_t, (B,), dtype=jnp.float32))
            if self.training:
                t_host = self.range[0] + t_host * (self.range[1] - self.range[0])
            t0 = float(t_host[0])
        elif isinstance(t, float):
            t0 = t
        else:
            t0 = float(np.asarray(t).reshape(-1)[0])

        ratio0 = _schedule_np(self.schedule, t0)
        n_masked = int(math.ceil(ratio0 * seq_len))
        n_contexts = seq_len - n_masked
        budget = self.budget if self.training else seq_len
        n_targets = min(budget, seq_len - n_contexts)

        perm = _random_perms_pallas(k_perm, B, seq_len)   # (B, seq_len) int32

        # TODO(synk): torch returns int64 (torch.long) indices; we keep int32 since
        #             jax x64 is disabled by default on TPU.
        context_indices = perm[:, :n_contexts]
        target_indices = perm[:, seq_len - n_targets:]
        return context_indices, target_indices


# ---------------------------------- main -------------------------------------
if __name__ == "__main__":
    key = jax.random.PRNGKey(0)
    B = 2
    spatial = (2, 8, 8)          # seq_len = 128 (one full lane)
    shape = (B,) + spatial
    t = 0.5

    gen = MaskGenPallas(schedule='cosine', shape=spatial, budget=1024, training=False)
    ctx, tgt = gen(shape, t=t, key=key)
    jax.block_until_ready((ctx, tgt))

    # ---- checks against the torch semantics ----
    seq_len = int(np.prod(spatial))
    ratio = math.cos(0.5 * math.pi * t)
    n_masked = int(math.ceil(ratio * seq_len))
    assert ctx.shape == (B, seq_len - n_masked), ctx.shape
    assert tgt.shape == (B, n_masked), tgt.shape        # eval: budget = seq_len
    both = np.concatenate([np.asarray(ctx), np.asarray(tgt)], axis=1)
    for b in range(B):
        assert np.array_equal(np.sort(both[b]), np.arange(seq_len)), \
            "per-sample indices are not a valid permutation"
    # different samples should (almost surely) get different permutations
    assert not np.array_equal(both[0], both[1])

    print("KERNEL_OK")
</pallas_src>

<mosaic_0001>
module attributes {stable_mosaic.version = 11 : i64} {
  func.func @_randperm_kernel(%arg0: i32, %arg1: memref<1x1x128xi32, #tpu.memory_space<vmem>>, %arg2: memref<1x128x1xi32, #tpu.memory_space<vmem>>, %arg3: memref<1x1x128xi32, #tpu.memory_space<vmem>>) attributes {dimension_semantics = [#tpu.dimension_semantics<parallel>], iteration_bounds = array<i64: 2>, scalar_prefetch = 0 : i64, scratch_operands = 0 : i64, tpu.core_type = #tpu.core_type<tc>, window_params = [{transform_indices = @transform_0, window_bounds = array<i64: 1, 1, 128>}, {transform_indices = @transform_1, window_bounds = array<i64: 1, 128, 1>}, {transform_indices = @transform_2, window_bounds = array<i64: 1, 1, 128>}]} {
    %c0 = arith.constant 0 : index
    %c0_0 = arith.constant 0 : index
    %c0_1 = arith.constant 0 : index
    %0 = vector.load %arg2[%c0, %c0_0, %c0_1] : memref<1x128x1xi32, #tpu.memory_space<vmem>>, vector<1x128x1xi32>
    %c0_i32 = arith.constant 0 : i32
    %1 = vector.broadcast %c0_i32 : i32 to vector<1x128x128xi32>
    %c0_2 = arith.constant 0 : index
    %c0_3 = arith.constant 0 : index
    %c0_4 = arith.constant 0 : index
    %2 = vector.load %arg1[%c0_2, %c0_3, %c0_4] : memref<1x1x128xi32, #tpu.memory_space<vmem>>, vector<1x1x128xi32>
    %3 = vector.broadcast %2 : vector<1x1x128xi32> to vector<1x128x128xi32>
    %4 = vector.broadcast %0 : vector<1x128x1xi32> to vector<1x128x128xi32>
    %5 = arith.cmpi slt, %3, %4 : vector<1x128x128xi32>
    %6 = arith.extui %5 : vector<1x128x128xi1> to vector<1x128x128xi32>
    %7 = arith.addi %1, %6 : vector<1x128x128xi32>
    %cst = arith.constant dense<0> : vector<1x128xi32>
    %8 = vector.multi_reduction <add>, %7, %cst [2] : vector<1x128x128xi32> to vector<1x128xi32>
    %9 = vector.shape_cast %8 : vector<1x128xi32> to vector<1x128x1xi32>
    %10 = tpu.iota {dimensions = array<i32: 2>} : vector<1x128x128xi32>
    %11 = tpu.iota {dimensions = array<i32: 2>} : vector<1x1x128xi32>
    %12 = arith.sitofp %11 : vector<1x1x128xi32> to vector<1x1x128xf32>
    %c0_i32_5 = arith.constant 0 : i32
    %13 = vector.broadcast %c0_i32_5 : i32 to vector<1x128x1xi32>
    %14 = arith.subi %9, %13 : vector<1x128x1xi32>
    %15 = vector.broadcast %14 : vector<1x128x1xi32> to vector<1x128x128xi32>
    %16 = arith.cmpi eq, %15, %10 : vector<1x128x128xi32>
    %17 = arith.extui %16 : vector<1x128x128xi1> to vector<1x128x128xi32>
    %18 = arith.sitofp %17 : vector<1x128x128xi32> to vector<1x128x128xf32>
    "tpu.trace_start"() <{level = 10 : i32, message = "bmi,bic->bmc"}> : () -> ()
    %cst_6 = arith.constant dense<0.000000e+00> : vector<1x1x128xf32>
    %19 = tpu.matmul %12, %18, %cst_6 {dimension_numbers = #tpu.dot_dimension_numbers<[2], [1], [1], [2], [0, 0, 0, 1, 1, 2], [0], [0]>} : vector<1x1x128xf32>, vector<1x128x128xf32>, vector<1x1x128xf32> -> vector<1x1x128xf32>
    "tpu.trace_stop"() : () -> ()
    %20 = vector.shape_cast %19 : vector<1x1x128xf32> to vector<1x128xf32>
    %21 = arith.fptosi %20 : vector<1x128xf32> to vector<1x128xi32>
    %c0_7 = arith.constant 0 : index
    %c0_8 = arith.constant 0 : index
    %c0_9 = arith.constant 0 : index
    %22 = vector.load %arg3[%c0_7, %c0_8, %c0_9] : memref<1x1x128xi32, #tpu.memory_space<vmem>>, vector<1x1x128xi32>
    %23 = vector.shape_cast %22 : vector<1x1x128xi32> to vector<1x128xi32>
    %24 = vector.shape_cast %21 : vector<1x128xi32> to vector<1x1x128xi32>
    tpu.vector_store %arg3[%c0_7, %c0_8, %c0_9], %24 {strides = array<i32>} : memref<1x1x128xi32, #tpu.memory_space<vmem>>, vector<1x1x128xi32>,
    return
  }
  func.func @transform_0(%arg0: i32) -> (i32, i32, i32) {
    %c0_i32 = arith.constant 0 : i32
    %c0_i32_0 = arith.constant 0 : i32
    %c0_i32_1 = arith.constant 0 : i32
    return %arg0, %c0_i32, %c0_i32_0 : i32, i32, i32
  }
  func.func @transform_1(%arg0: i32) -> (i32, i32, i32) {
    %c0_i32 = arith.constant 0 : i32
    %c0_i32_0 = arith.constant 0 : i32
    %c0_i32_1 = arith.constant 0 : i32
    return %arg0, %c0_i32, %c0_i32_0 : i32, i32, i32
  }
  func.func @transform_2(%arg0: i32) -> (i32, i32, i32) {
    %c0_i32 = arith.constant 0 : i32
    %c0_i32_0 = arith.constant 0 : i32
    %c0_i32_1 = arith.constant 0 : i32
    return %arg0, %c0_i32, %c0_i32_0 : i32, i32, i32
  }
}

</mosaic_0001>

<bundles_post_ra>
// kernel: tpu_custom_call.1
= control target key start
LH: loop header
LB: loop body
LE: loop exit
PB: predicated region body
PF: predicated region fallthrough
CT: control target
= control target key end

     0   :  { %7 = vsyncpa [#allocation3], 0  ;;  %s1078_s0 = inlined_call_operand.vmem [shape: s32[2,1,128], index: 0, kind: input, shape index: {}]   ;;  %s1079_s1 = inlined_call_operand.vmem [shape: s32[2,128,1], index: 1, kind: input, shape index: {}]   ;;  %s1080_s2 = inlined_call_operand.hbm [shape: s32[2,1,128], index: 2, kind: output, shape index: {}]  }
   0x1   :  { %9 = vsyncpa [#allocation3 + $0x1], 0  ;;  %s900_s9 = smov 0   ;;  %s902_s10 = smov 0  }
   0x2   :  { %s904_s11 = smov 0   ;;  %s906_s12 = smov 0  }
   0x3 LB: > { %s921_s13 = sadd.s32 4294967295, %s877_s12   ;;  %s648_s14 = sadd.s32 4294967294, %s877_s12   ;;  %s877_s12 = sphi %s906_s12, %s1086_s12   ;;  %s873_s11 = sphi %s904_s11, %s1085_s11   ;;  %s869_s10 = sphi %s902_s10, %s1084_s10   ;;  %s865_s9 = sphi %s900_s9, %s1083_s9  }
   0x4   : > { %s925_s15 = sadd.s32 1, %s877_s12   ;;  %s74_s16 = sadd.s32 1, %s873_s11 }
   0x5   : > { %s71_s17 = ssub.s32 %s877_s12, %s925_s15  ;;  %p84_p0 = scmp.ne.s32.totalorder %s873_s11, %s869_s10 }
   0x6   : > { %p72_p1 = scmp.eq.s32.totalorder %s71_s17, 0  ;;  %p85_p2 = scmp.eq.s32.totalorder %s921_s13, 1 }
   0x7   : > { %p90_p3 = scmp.ne.s32.totalorder %s869_s10, %s865_s9  ;;  %p91_p4 = scmp.eq.s32.totalorder %s648_s14, 1 }
   0x8   : > { %s936_s18 = scalar_select %p72_p1, %s873_s11, %s74_s16  }
   0x9   : > { %p938_p5 = por %p85_p2, %p84_p0  ;;  %p942_p6 = por %p91_p4, %p90_p3 }
   0xa   : > { %p651_p7 = scmp.ge.s32.totalorder %s877_s12, 1  ;;  %p123_p8 = scmp.lt.s32.totalorder %s877_s12, 3 }
   0xc   : > { %p124_p9 = pnand %p651_p7, %p123_p8 }
   0xd   : > { %p147_p10 = scmp.lt.s32.totalorder (!%p124_p9), %s921_s13, 1  ;;  %v879_v0 = vmov (!%p124_p9), 0   ;;  %s145_s29 = sand.u32 (!%p124_p9), 1, %s869_s10  }
   0xe   : > { %127 = sbr.rel (%p124_p9) target bundleno = 605 (0x25d), region = 28  ;;  %814 = vset.pattern.permute.xlu1 (!%p124_p9), %v879_v0  ;;  %813 = vset.pattern.permute.xlu0 (!%p124_p9), %v879_v0  ;;  %s687_s30 = sshll.u32 (!%p124_p9), %s921_s13, 4 }
   0xf   : > { %s146_s3 = scalar_lea.vmem (!%p124_p9), [#allocation2], %s145_s29  ;;  %s1036_s7 = scalar_lea.hbm (!%p124_p9), %s1080_s2, %s687_s30 }
  0x10   : > { %s584_s4 = sshll.u32 (!%p124_p9), %s146_s3, 4  ;;  %s572_s8 = scalar_lea.sflag (!%p124_p9), [#allocation3], %s145_s29  ;;  %s1038_s4 = int_to_ptr.vmem [resolvable:$true] %s584_s4 }
  0x11   : > { %s815_s14 = scalar_lea.vmem (!%p124_p9), %s1038_s4, 16 }
  0x12   : > { %p816_p11 = scmp.ne.s32.totalorder (!%p124_p9), %s1038_s4, %s815_s14 }
  0x14   : > { %p817_p12 = pnand (!%p124_p9), %p816_p11, %p938_p5 }
  0x15   : > { %s952_s21 = scalar_select %p147_p10, %s921_s13, 1 }
  0x16   : > { %p818_p13 = pneg %p817_p12  ;;  %s884_s13 = smov [#allocation2]  }
  0x17   : > { %s690_s22 = sshll.u32 %s952_s21, 7  ;;  %s149_s28 = scalar_lea.vmem %s1078_s0, %s952_s21 }
  0x18   : > { %s154_s25 = scalar_lea.vmem %s1079_s1, %s690_s22  ;;  %v962_v17 = vld [vmem:[%s149_s28] ss:$0 sm:$0xff]  ;;  %s819_s16 = sshll.u32 %s884_s13, 4  ;;  %s820_s16 = int_to_ptr.vmem [resolvable:$false] %s819_s16 }
  0x19   : > { %v157_v1 = vld [vmem:[%s154_s25 + $0x10] sm:$0xff]  ;;  %v155_v2 = vld [vmem:[%s154_s25] sm:$0xff]  ;;  %v158_v3 = vld [vmem:[%s154_s25 + $0x18] sm:$0xff]  ;;  %s821_s17 = scalar_lea.vmem %s820_s16, 32  ;;  %p822_p0 = scmp.lt.s32.totalorder %s1038_s4, %s820_s16 }
  0x1a   : > { %183 = vperm.xlu1 %814, %v157_v1   ;;  %177 = vperm.xlu0 %813, %v155_v2   ;;  %v156_v4 = vld [vmem:[%s154_s25 + $0x8] sm:$0xff]  ;;  %v159_v6 = vld [vmem:[%s154_s25 + $0x20] sm:$0xff]  ;;  %v162_v7 = vld [vmem:[%s154_s25 + $0x38] sm:$0xff]  ;;  %p823_p1 = scmp.lt.s32.totalorder %s821_s17, %s815_s14 }
  0x1b   : > { %v160_v5 = vld [vmem:[%s154_s25 + $0x28] sm:$0xff]  ;;  %v161_v8 = vld [vmem:[%s154_s25 + $0x30] sm:$0xff]  ;;  %v163_v10 = vld [vmem:[%s154_s25 + $0x40] sm:$0xff] }
  0x1c   : > { %v164_v9 = vld [vmem:[%s154_s25 + $0x48] sm:$0xff]  ;;  %v166_v11 = vld [vmem:[%s154_s25 + $0x58] sm:$0xff]  ;;  %v165_v12 = vld [vmem:[%s154_s25 + $0x50] sm:$0xff]  ;;  %p824_p2 = por %p823_p1, %p822_p0 }
  0x1d   : > { %v168_v13 = vld [vmem:[%s154_s25 + $0x68] sm:$0xff]  ;;  %v167_v14 = vld [vmem:[%s154_s25 + $0x60] sm:$0xff]  ;;  %v170_v15 = vld [vmem:[%s154_s25 + $0x78] sm:$0xff] }
  0x1e   : > { %186 = vperm.xlu1 %814, %v158_v3   ;;  %180 = vperm.xlu0 %813, %v156_v4   ;;  %v169_v16 = vld [vmem:[%s154_s25 + $0x70] sm:$0xff]  ;;  %p825_p3 = pnand %p824_p2, %p818_p13 }
  0x22   : > { %192 = vperm.xlu1 %814, %v160_v5   ;;  %189 = vperm.xlu0 %813, %v159_v6  }
  0x26   : > { %198 = vperm.xlu1 %814, %v162_v7   ;;  %195 = vperm.xlu0 %813, %v161_v8  }
  0x2a   : > { %204 = vperm.xlu1 %814, %v164_v9   ;;  %201 = vperm.xlu0 %813, %v163_v10   ;;  %v880_v9 = vmov 0.0|0.0  }
  0x2b   : > { %743 = vmatprep.subr.bf16.mxu0 %v880_v9 }
  0x2e   : > { %210 = vperm.xlu1 %814, %v166_v11   ;;  %207 = vperm.xlu0 %813, %v165_v12  }
  0x32   : > { %216 = vperm.xlu1 %814, %v168_v13   ;;  %213 = vperm.xlu0 %813, %v167_v14  }
  0x36   : > { %222 = vperm.xlu1 %814, %v170_v15   ;;  %219 = vperm.xlu0 %813, %v169_v16  }
  0x99   : > { %v184_v18 = vpop.permute.xlu1 %183  ;;  %v178_v19 = vpop.permute.xlu0 %177 }
  0x9a   : > { %vm226_vm0 = vcmp.lt.s32.totalorder %v962_v17, %v184_v18  ;;  %vm224_vm1 = vcmp.lt.s32.totalorder %v962_v17, %v178_v19 }
  0x9b   : > { %v240_v20 = vsel %vm224_vm1, 1, %v879_v0  ;;  %v242_v22 = vsel %vm226_vm0, 1, %v879_v0  ;;  %vm881_vm0 = vmmov 0  }
  0x9c   : > { %v257_v21 = vshrl.u32 %v240_v20, 16  ;;  %v256_v25 = vand.u32 65535, %v240_v20  ;;  %v281_v29 = vshrl.u32 %v242_v22, 16  ;;  %v280_v38 = vand.u32 65535, %v242_v22 }
  0x9d   : > { %v181_v23 = vpop.permute.xlu0 %180  ;;  %v187_v26 = vpop.permute.xlu1 %186 }
  0x9e   : > { %vm225_vm2 = vcmp.lt.s32.totalorder %v962_v17, %v181_v23  ;;  %v259_v24 = vcvt.s32.f32 %v257_v21  ;;  %vm227_vm3 = vcmp.lt.s32.totalorder %v962_v17, %v187_v26  ;;  %v258_v32 = vcvt.s32.f32 %v256_v25 }
  0x9f   : > { %v241_v27 = vsel %vm225_vm2, 1, %v879_v0  ;;  %v243_v34 = vsel %vm227_vm3, 1, %v879_v0  ;;  %v283_v35 = vcvt.s32.f32 %v281_v29  ;;  %v282_v42 = vcvt.s32.f32 %v280_v38 }
  0xa0   : > { %262 = vadd.xlane.f32.xlu0 %v259_v24  ;;  %v269_v28 = vshrl.u32 %v241_v27, 16  ;;  %v268_v33 = vand.u32 65535, %v241_v27  ;;  %v293_v39 = vshrl.u32 %v243_v34, 16  ;;  %v292_v45 = vand.u32 65535, %v243_v34 }
  0xa1   : > { %v190_v30 = vpop.permute.xlu0 %189  ;;  %v193_v36 = vpop.permute.xlu1 %192 }
  0xa2   : > { %v271_v31 = vcvt.s32.f32 %v269_v28  ;;  %vm228_vm4 = vcmp.lt.s32.totalorder %v962_v17, %v190_v30  ;;  %v270_v37 = vcvt.s32.f32 %v268_v33  ;;  %vm229_vm5 = vcmp.lt.s32.totalorder %v962_v17, %v193_v36 }
  0xa3   : > { %v244_v40 = vsel %vm228_vm4, 1, %v879_v0  ;;  %v295_v43 = vcvt.s32.f32 %v293_v39  ;;  %v245_v46 = vsel %vm229_vm5, 1, %v879_v0  ;;  %v294_v49 = vcvt.s32.f32 %v292_v45 }
  0xa4   : > { %274 = vadd.xlane.f32.xlu1 %v271_v31  ;;  %260 = vadd.xlane.f32.xlu0 %v258_v32  ;;  %v305_v44 = vshrl.u32 %v244_v40, 16  ;;  %v304_v50 = vand.u32 65535, %v244_v40  ;;  %v317_v51 = vshrl.u32 %v245_v46, 16  ;;  %v316_v57 = vand.u32 65535, %v245_v46 }
  0xa5   : > { %v196_v41 = vpop.permute.xlu0 %195  ;;  %v199_v47 = vpop.permute.xlu1 %198 }
  0xa6   : > { %vm230_vm6 = vcmp.lt.s32.totalorder %v962_v17, %v196_v41  ;;  %v307_v48 = vcvt.s32.f32 %v305_v44  ;;  %vm231_vm7 = vcmp.lt.s32.totalorder %v962_v17, %v199_v47  ;;  %v306_v54 = vcvt.s32.f32 %v304_v50 }
  0xa7   : > { %v246_v52 = vsel %vm230_vm6, 1, %v879_v0  ;;  %v319_v55 = vcvt.s32.f32 %v317_v51  ;;  %v247_v58 = vsel %vm231_vm7, 1, %v879_v0  ;;  %v318_v61 = vcvt.s32.f32 %v316_v57 }
  0xa8   : > { %286 = vadd.xlane.f32.xlu1 %v283_v35  ;;  %272 = vadd.xlane.f32.xlu0 %v270_v37  ;;  %v329_v56 = vshrl.u32 %v246_v52, 16  ;;  %v328_v62 = vand.u32 65535, %v246_v52  ;;  %v341_v63 = vshrl.u32 %v247_v58, 16  ;;  %v340_v6 = vand.u32 65535, %v247_v58 }
  0xa9   : > { %v202_v53 = vpop.permute.xlu0 %201  ;;  %v205_v59 = vpop.permute.xlu1 %204  ;;  %v882_v52 = vmov 0.0   ;;  %v448_v58 = vlaneseq }
  0xaa   : > { %vm232_vm8 = vcmp.lt.s32.totalorder %v962_v17, %v202_v53  ;;  %v331_v60 = vcvt.s32.f32 %v329_v56  ;;  %vm233_vm9 = vcmp.lt.s32.totalorder %v962_v17, %v205_v59  ;;  %v330_v3 = vcvt.s32.f32 %v328_v62  ;;  %740 = vmatprep.mubr.msk.f32.mxu0 %vm881_vm0, %v882_v52 }
  0xab   : > { %v248_v1 = vsel %vm232_vm8, 1, %v879_v0  ;;  %v343_v4 = vcvt.s32.f32 %v341_v63  ;;  %v249_v7 = vsel %vm233_vm9, 1, %v879_v0  ;;  %v342_v11 = vcvt.s32.f32 %v340_v6 }
  0xac   : > { %284 = vadd.xlane.f32.xlu1 %v282_v42  ;;  %298 = vadd.xlane.f32.xlu0 %v295_v43  ;;  %v353_v5 = vshrl.u32 %v248_v1, 16  ;;  %v352_v12 = vand.u32 65535, %v248_v1  ;;  %v365_v13 = vshrl.u32 %v249_v7, 16  ;;  %v364_v20 = vand.u32 65535, %v249_v7 }
  0xad   : > { %v208_v2 = vpop.permute.xlu0 %207  ;;  %v211_v8 = vpop.permute.xlu1 %210 }
  0xae   : > { %vm234_vm10 = vcmp.lt.s32.totalorder %v962_v17, %v208_v2  ;;  %v355_v10 = vcvt.s32.f32 %v353_v5  ;;  %vm235_vm11 = vcmp.lt.s32.totalorder %v962_v17, %v211_v8  ;;  %v354_v16 = vcvt.s32.f32 %v352_v12 }
  0xaf   : > { %v250_v14 = vsel %vm234_vm10, 1, %v879_v0  ;;  %v367_v18 = vcvt.s32.f32 %v365_v13  ;;  %v251_v21 = vsel %vm235_vm11, 1, %v879_v0  ;;  %v366_v24 = vcvt.s32.f32 %v364_v20 }
  0xb0   : > { %310 = vadd.xlane.f32.xlu1 %v307_v48  ;;  %296 = vadd.xlane.f32.xlu0 %v294_v49  ;;  %v377_v19 = vshrl.u32 %v250_v14, 16  ;;  %v376_v25 = vand.u32 65535, %v250_v14  ;;  %v389_v26 = vshrl.u32 %v251_v21, 16  ;;  %v388_v32 = vand.u32 65535, %v251_v21 }
  0xb1   : > { %v214_v15 = vpop.permute.xlu0 %213  ;;  %v217_v22 = vpop.permute.xlu1 %216  ;;  %v997_v2 = vand.u32 127, %v448_v58 }
  0xb2   : > { %vm236_vm12 = vcmp.lt.s32.totalorder %v962_v17, %v214_v15  ;;  %v379_v23 = vcvt.s32.f32 %v377_v19  ;;  %vm237_vm13 = vcmp.lt.s32.totalorder %v962_v17, %v217_v22  ;;  %v378_v29 = vcvt.s32.f32 %v376_v25 }
  0xb3   : > { %v252_v27 = vsel %vm236_vm12, 1, %v879_v0  ;;  %v391_v30 = vcvt.s32.f32 %v389_v26  ;;  %v253_v33 = vsel %vm237_vm13, 1, %v879_v0  ;;  %v390_v36 = vcvt.s32.f32 %v388_v32 }
  0xb4   : > { %308 = vadd.xlane.f32.xlu1 %v306_v54  ;;  %322 = vadd.xlane.f32.xlu0 %v319_v55  ;;  %v401_v31 = vshrl.u32 %v252_v27, 16  ;;  %v400_v37 = vand.u32 65535, %v252_v27  ;;  %v413_v38 = vshrl.u32 %v253_v33, 16  ;;  %v412_v43 = vand.u32 65535, %v253_v33 }
  0xb5   : > { %v220_v28 = vpop.permute.xlu0 %219  ;;  %v223_v34 = vpop.permute.xlu1 %222 }
  0xb6   : > { %vm238_vm14 = vcmp.lt.s32.totalorder %v962_v17, %v220_v28  ;;  %v403_v35 = vcvt.s32.f32 %v401_v31  ;;  %vm239_vm15 = vcmp.lt.s32.totalorder %v962_v17, %v223_v34  ;;  %v402_v40 = vcvt.s32.f32 %v400_v37 }
  0xb7   : > { %v254_v39 = vsel %vm238_vm14, 1, %v879_v0  ;;  %v415_v41 = vcvt.s32.f32 %v413_v38  ;;  %v255_v44 = vsel %vm239_vm15, 1, %v879_v0  ;;  %v414_v46 = vcvt.s32.f32 %v412_v43 }
  0xb8   : > { %334 = vadd.xlane.f32.xlu1 %v331_v60  ;;  %320 = vadd.xlane.f32.xlu0 %v318_v61  ;;  %v425_v42 = vshrl.u32 %v254_v39, 16  ;;  %v424_v47 = vand.u32 65535, %v254_v39  ;;  %v437_v48 = vshrl.u32 %v255_v44, 16  ;;  %v436_v51 = vand.u32 65535, %v255_v44 }
  0xba   : > { %v427_v45 = vcvt.s32.f32 %v425_v42  ;;  %v426_v49 = vcvt.s32.f32 %v424_v47  ;;  %v439_v50 = vcvt.s32.f32 %v437_v48  ;;  %v438_v17 = vcvt.s32.f32 %v436_v51 }
  0xbc   : > { %332 = vadd.xlane.f32.xlu1 %v330_v3  ;;  %346 = vadd.xlane.f32.xlu0 %v343_v4 }
  0xc0   : > { %358 = vadd.xlane.f32.xlu1 %v355_v10  ;;  %344 = vadd.xlane.f32.xlu0 %v342_v11  ;;  %v883_v11 = vmov 1.0|1.0  }
  0xc4   : > { %356 = vadd.xlane.f32.xlu1 %v354_v16  ;;  %370 = vadd.xlane.f32.xlu0 %v367_v18 }
  0xc8   : > { %382 = vadd.xlane.f32.xlu1 %v379_v23  ;;  %368 = vadd.xlane.f32.xlu0 %v366_v24 }
  0xcc   : > { %380 = vadd.xlane.f32.xlu1 %v378_v29  ;;  %394 = vadd.xlane.f32.xlu0 %v391_v30 }
  0xd0   : > { %406 = vadd.xlane.f32.xlu1 %v403_v35  ;;  %392 = vadd.xlane.f32.xlu0 %v390_v36 }
  0xd4   : > { %404 = vadd.xlane.f32.xlu1 %v402_v40  ;;  %418 = vadd.xlane.f32.xlu0 %v415_v41 }
  0xd8   : > { %430 = vadd.xlane.f32.xlu1 %v427_v45  ;;  %416 = vadd.xlane.f32.xlu0 %v414_v46 }
  0xdc   : > { %428 = vadd.xlane.f32.xlu1 %v426_v49  ;;  %442 = vadd.xlane.f32.xlu0 %v439_v50 }
  0xe0   : > { %440 = vadd.xlane.f32.xlu0 %v438_v17 }
 0x12d   : > { %v263_v53 = vpop.xlane.xlu0 %262 }
 0x12e   : > { %v265_v0 = vcvt.f32.s32 %v263_v53 }
 0x130   : > { %v266_v59 = vshll.u32 %v265_v0, 16 }
 0x131   : > { %v275_v54 = vpop.xlane.xlu1 %274  ;;  %v261_v55 = vpop.xlane.xlu0 %260 }
 0x132   : > { %v277_v56 = vcvt.f32.s32 %v275_v54  ;;  %v264_v57 = vcvt.f32.s32 %v261_v55 }
 0x134   : > { %v278_v62 = vshll.u32 %v277_v56, 16  ;;  %v267_v63 = vadd.s32 %v266_v59, %v264_v57 }
 0x135   : > { %v287_v60 = vpop.xlane.xlu1 %286  ;;  %v273_v61 = vpop.xlane.xlu0 %272 }
 0x136   : > { %v276_v1 = vcvt.f32.s32 %v273_v61  ;;  %v289_v3 = vcvt.f32.s32 %v287_v60  ;;  %vm451_vm1 = vcmp.eq.s32.totalorder %v267_v63, %v997_v2 }
 0x138   : > { %v279_v4 = vadd.s32 %v278_v62, %v276_v1  ;;  %v290_v10 = vshll.u32 %v289_v3, 16 }
 0x139   : > { %v285_v5 = vpop.xlane.xlu1 %284  ;;  %v299_v6 = vpop.xlane.xlu0 %298 }
 0x13a   : > { %v288_v7 = vcvt.f32.s32 %v285_v5  ;;  %v301_v8 = vcvt.f32.s32 %v299_v6  ;;  %vm452_vm2 = vcmp.eq.s32.totalorder %v279_v4, %v997_v2 }
 0x13b   : > { %vm744_vm3 = vmpackc.low %vm452_vm2, %vm451_vm1 }
 0x13c   : > { %745 = vmatpush3.bf16.msk.msra.mxu0 %vm744_vm3, %v883_v11  ;;  %v291_v14 = vadd.s32 %v290_v10, %v288_v7  ;;  %v302_v15 = vshll.u32 %v301_v8, 16 }
 0x13d   : > { %v311_v12 = vpop.xlane.xlu1 %310  ;;  %v297_v13 = vpop.xlane.xlu0 %296  ;;  %746 = vmatprep.subr.bf16.mxu0 %v880_v9 }
 0x13e   : > { %v300_v16 = vcvt.f32.s32 %v297_v13  ;;  %v313_v18 = vcvt.f32.s32 %v311_v12  ;;  %vm453_vm4 = vcmp.eq.s32.totalorder %v291_v14, %v997_v2 }
 0x140   : > { %v303_v19 = vadd.s32 %v302_v15, %v300_v16  ;;  %v314_v24 = vshll.u32 %v313_v18, 16 }
 0x141   : > { %v309_v20 = vpop.xlane.xlu1 %308  ;;  %v323_v21 = vpop.xlane.xlu0 %322 }
 0x142   : > { %v312_v22 = vcvt.f32.s32 %v309_v20  ;;  %v325_v23 = vcvt.f32.s32 %v323_v21  ;;  %vm454_vm5 = vcmp.eq.s32.totalorder %v303_v19, %v997_v2 }
 0x143   : > { %vm747_vm6 = vmpackc.low %vm454_vm5, %vm453_vm4 }
 0x144   : > { %748 = vmatpush3.bf16.msk.msra.mxu0 %vm747_vm6, %v883_v11  ;;  %v315_v27 = vadd.s32 %v314_v24, %v312_v22  ;;  %v326_v28 = vshll.u32 %v325_v23, 16 }
 0x145   : > { %v335_v25 = vpop.xlane.xlu1 %334  ;;  %v321_v26 = vpop.xlane.xlu0 %320  ;;  %749 = vmatprep.subr.bf16.mxu0 %v880_v9 }
 0x146   : > { %v324_v29 = vcvt.f32.s32 %v321_v26  ;;  %v337_v30 = vcvt.f32.s32 %v335_v25  ;;  %vm455_vm7 = vcmp.eq.s32.totalorder %v315_v27, %v997_v2 }
 0x148   : > { %v327_v31 = vadd.s32 %v326_v28, %v324_v29  ;;  %v338_v36 = vshll.u32 %v337_v30, 16  ;;  %v450_v29 = vcvt.s32.f32 %v997_v2 }
 0x149   : > { %v333_v32 = vpop.xlane.xlu1 %332  ;;  %v347_v33 = vpop.xlane.xlu0 %346 }
 0x14a   : > { %v336_v34 = vcvt.f32.s32 %v333_v32  ;;  %v349_v35 = vcvt.f32.s32 %v347_v33  ;;  %vm456_vm8 = vcmp.eq.s32.totalorder %v327_v31, %v997_v2 }
 0x14b   : > { %vm750_vm9 = vmpackc.low %vm456_vm8, %vm455_vm7 }
 0x14c   : > { %751 = vmatpush3.bf16.msk.msra.mxu0 %vm750_vm9, %v883_v11  ;;  %v339_v39 = vadd.s32 %v338_v36, %v336_v34  ;;  %v350_v40 = vshll.u32 %v349_v35, 16 }
 0x14d   : > { %v359_v37 = vpop.xlane.xlu1 %358  ;;  %v345_v38 = vpop.xlane.xlu0 %344  ;;  %752 = vmatprep.subr.bf16.mxu0 %v880_v9 }
 0x14e   : > { %v348_v41 = vcvt.f32.s32 %v345_v38  ;;  %v361_v42 = vcvt.f32.s32 %v359_v37  ;;  %vm457_vm10 = vcmp.eq.s32.totalorder %v339_v39, %v997_v2 }
 0x150   : > { %v351_v43 = vadd.s32 %v350_v40, %v348_v41  ;;  %v362_v48 = vshll.u32 %v361_v42, 16 }
 0x151   : > { %v357_v44 = vpop.xlane.xlu1 %356  ;;  %v371_v45 = vpop.xlane.xlu0 %370 }
 0x152   : > { %v360_v46 = vcvt.f32.s32 %v357_v44  ;;  %v373_v47 = vcvt.f32.s32 %v371_v45  ;;  %vm458_vm11 = vcmp.eq.s32.totalorder %v351_v43, %v997_v2 }
 0x153   : > { %vm753_vm12 = vmpackc.low %vm458_vm11, %vm457_vm10 }
 0x154   : > { %754 = vmatpush3.bf16.msk.msra.mxu0 %vm753_vm12, %v883_v11  ;;  %v363_v51 = vadd.s32 %v362_v48, %v360_v46  ;;  %v374_v17 = vshll.u32 %v373_v47, 16 }
 0x155   : > { %v383_v49 = vpop.xlane.xlu1 %382  ;;  %v369_v50 = vpop.xlane.xlu0 %368  ;;  %755 = vmatprep.subr.bf16.mxu0 %v880_v9 }
 0x156   : > { %v372_v52 = vcvt.f32.s32 %v369_v50  ;;  %v385_v53 = vcvt.f32.s32 %v383_v49  ;;  %vm459_vm13 = vcmp.eq.s32.totalorder %v363_v51, %v997_v2 }
 0x158   : > { %v375_v0 = vadd.s32 %v374_v17, %v372_v52  ;;  %v386_v58 = vshll.u32 %v385_v53, 16 }
 0x159   : > { %v381_v54 = vpop.xlane.xlu1 %380  ;;  %v395_v55 = vpop.xlane.xlu0 %394 }
 0x15a   : > { %v384_v56 = vcvt.f32.s32 %v381_v54  ;;  %v397_v57 = vcvt.f32.s32 %v395_v55  ;;  %vm460_vm14 = vcmp.eq.s32.totalorder %v375_v0, %v997_v2 }
 0x15b   : > { %vm756_vm15 = vmpackc.low %vm460_vm14, %vm459_vm13 }
 0x15c   : > { %757 = vmatpush3.bf16.msk.msra.mxu0 %vm756_vm15, %v883_v11  ;;  %v387_v61 = vadd.s32 %v386_v58, %v384_v56  ;;  %v398_v62 = vshll.u32 %v397_v57, 16 }
 0x15d   : > { %v407_v59 = vpop.xlane.xlu1 %406  ;;  %v393_v60 = vpop.xlane.xlu0 %392  ;;  %758 = vmatprep.subr.bf16.mxu0 %v880_v9 }
 0x15e   : > { %v396_v63 = vcvt.f32.s32 %v393_v60  ;;  %v409_v1 = vcvt.f32.s32 %v407_v59  ;;  %vm461_vm0 = vcmp.eq.s32.totalorder %v387_v61, %v997_v2 }
 0x160   : > { %v399_v3 = vadd.s32 %v398_v62, %v396_v63  ;;  %v410_v8 = vshll.u32 %v409_v1, 16 }
 0x161   : > { %v405_v4 = vpop.xlane.xlu1 %404  ;;  %v419_v5 = vpop.xlane.xlu0 %418 }
 0x162   : > { %v408_v6 = vcvt.f32.s32 %v405_v4  ;;  %v421_v7 = vcvt.f32.s32 %v419_v5  ;;  %vm462_vm1 = vcmp.eq.s32.totalorder %v399_v3, %v997_v2 }
 0x163   : > { %vm759_vm2 = vmpackc.low %vm462_vm1, %vm461_vm0 }
 0x164   : > { %760 = vmatpush3.bf16.msk.msra.mxu0 %vm759_vm2, %v883_v11  ;;  %v411_v13 = vadd.s32 %v410_v8, %v408_v6  ;;  %v422_v14 = vshll.u32 %v421_v7, 16 }
 0x165   : > { %v431_v10 = vpop.xlane.xlu1 %430  ;;  %v417_v12 = vpop.xlane.xlu0 %416  ;;  %761 = vmatprep.subr.bf16.mxu0 %v880_v9 }
 0x166   : > { %v420_v15 = vcvt.f32.s32 %v417_v12  ;;  %v433_v16 = vcvt.f32.s32 %v431_v10  ;;  %vm463_vm3 = vcmp.eq.s32.totalorder %v411_v13, %v997_v2 }
 0x168   : > { %v423_v18 = vadd.s32 %v422_v14, %v420_v15  ;;  %v434_v23 = vshll.u32 %v433_v16, 16 }
 0x169   : > { %v429_v19 = vpop.xlane.xlu1 %428  ;;  %v443_v20 = vpop.xlane.xlu0 %442 }
 0x16a   : > { %v432_v21 = vcvt.f32.s32 %v429_v19  ;;  %v445_v22 = vcvt.f32.s32 %v443_v20  ;;  %vm464_vm4 = vcmp.eq.s32.totalorder %v423_v18, %v997_v2 }
 0x16b   : > { %vm762_vm5 = vmpackc.low %vm464_vm4, %vm463_vm3 }
 0x16c   : > { %763 = vmatpush3.bf16.msk.msra.mxu0 %vm762_vm5, %v883_v11  ;;  %v435_v25 = vadd.s32 %v434_v23, %v432_v21  ;;  %v446_v26 = vshll.u32 %v445_v22, 16 }
 0x16d   : > { %v441_v24 = vpop.xlane.xlu0 %440  ;;  %764 = vmatprep.subr.bf16.mxu0 %v880_v9 }
 0x16e   : > { %v444_v27 = vcvt.f32.s32 %v441_v24  ;;  %vm465_vm6 = vcmp.eq.s32.totalorder %v435_v25, %v997_v2 }
 0x170   : > { %v447_v28 = vadd.s32 %v446_v26, %v444_v27 }
 0x172   : > { %vm466_vm7 = vcmp.eq.s32.totalorder %v447_v28, %v997_v2 }
 0x173   : > { %vm765_vm8 = vmpackc.low %vm466_vm7, %vm465_vm6 }
 0x174   : > { %766 = vmatpush3.bf16.msk.msra.mxu0 %vm765_vm8, %v883_v11 }
 0x177   : > { %741 = vmatmul.mubr.f32.vlgmr.msra.gmra.mrb[0].mxu0 %v450_v29 }
 0x24a   : > { %v565_v30 = vpop.f32.mrb[0].mxu0 }
 0x24b   : > { %v767_v9 = vtrunc.f32 %v565_v30  ;;  %v742_v31 = vpop.f32.mrb[1].mxu0 }
 0x24d   : > { %v768_v32 = vcvt.f32.s32 %v767_v9 }
 0x24f   : > { %570 = vst [vmem:[%s146_s3] sm:$0x1] %v768_v32 }
 0x250   : > { %828 = shalt.err (!%p825_p3)
}
 0x251   : > { %s829_s21 = scalar_lea.hbm %s1036_s7, 16  ;;  %s833_s24 = scalar_lea.hbm %s1080_s2, 32 }
 0x252   : > { %p830_p4 = scmp.ne.s32.totalorder %s1036_s7, %s829_s21  ;;  %p834_p9 = scmp.lt.u32.totalorder %s1036_s7, %s1080_s2 }
 0x253   : > { %p835_p10 = scmp.lt.u32.totalorder %s833_s24, %s829_s21  ;;  %p837_p12 = scmp.lt.u32.totalorder %s829_s21, %s1036_s7 }
 0x254   : > { %p831_p7 = pnand %p830_p4, %p938_p5 }
 0x255   : > { %p836_p11 = por %p835_p10, %p834_p9 }
 0x256   : > { %p832_p8 = pneg %p831_p7 }
 0x257   : > { %p838_p13 = por %p837_p12, %p836_p11 }
 0x259   : > { %p839_p0 = pnand %p838_p13, %p832_p8 }
 0x25b   : > { %842 = shalt.err (!%p839_p0)
}
 0x25c   : > { %769 = dma.vmem_to_hbm [thread:$0]  (%p938_p5), %s1038_s4, 16, %s1036_s7, %s572_s8  }
 0x25d PF: > { %p775_p1 = scmp.ge.s32.totalorder %s877_s12, 2  ;;  %s596_s27 = sand.u32 1, %s865_s9  }
 0x25e   : > { %s597_s28 = scalar_lea.sflag [#allocation3], %s596_s27 }
 0x25f   : > { %p772_p2 = pnand %p775_p1, %p942_p6 }
 0x261   : > { %860 = dma.done.wait (!%p772_p2), %s597_s28, 16  }
 0x262   : > { %862 = vsyncadd (!%p772_p2), %s597_s28, 4294967280  ;;  %p12_p3 = scmp.ge.s32.totalorder %s925_s15, 4   ;;  %s1083_s9 = smov %s869_s10 }
 0x263   : > { %s1084_s10 = smov %s873_s11  ;;  %s1085_s11 = smov %s936_s18 }
 0x264   : > { %s1086_s12 = smov %s925_s15  ;;  %14 = sbr.rel (!%p12_p3) target bundleno = 3 (0x3), region = 66 }
 0x26b   :  { %601 = vsyncpa [#allocation3], 1 }
 0x26c   :  { %603 = vsyncpa [#allocation3 + $0x1], 1 }

</bundles_post_ra>
